<compile_context>
chip_gen: v5e
topology: v5e:2x2
jax: 0.10.0
libtpu: 0.0.40
codegen_flags: <defaults>
</compile_context>

<pallas_src>
import jax
import jax.numpy as jnp
from jax import lax
from jax.experimental import pallas as pl
from jax.experimental.pallas import tpu as pltpu

_HIDDEN = 64


def _round_up(n, m):
    return ((n + m - 1) // m) * m


def _tpu_vmem_capacity_bytes():
    try:
        return int(pltpu.get_tpu_info().vmem_capacity_bytes)
    except Exception:
        return 64 * 1024 * 1024  # conservative fallback (v7x per-TC figure)


def _make_kernel(batch_size, block_b, ragged):
    """Kernel closure: y = sigmoid(w2_row @ tanh(W1^T @ x^T + b1) + b2).

    Batch lives on LANES throughout: h is (H, tb), output is (1, tb).  tanh
    therefore runs on lane-dense vregs, layer 2 needs no hidden transpose,
    and the output store is unmasked / lane-dense with contiguous writeback.
    """

    def kernel(x_ref, w1t_ref, b1_ref, w2_ref, b2_ref, o_ref):
        # Layer 1 on the MXU: (H, D) @ (D, tb) -> (H, tb), f32 accumulation.
        # The (tb, D) x tile is the only operand that needs relayout; f32
        # transpose (well-supported) then bf16 cast -> single-pass MXU.
        x_t = jnp.transpose(x_ref[...]).astype(jnp.bfloat16)          # (D, tb)
        h = jnp.dot(w1t_ref[...], x_t, preferred_element_type=jnp.float32)
        h = jnp.tanh(h + b1_ref[...])                                  # + (H, 1) column bias

        # Layer 2: canonical (1, H) @ (H, tb) -> (1, tb); batch stays on lanes.
        z = jnp.dot(w2_ref[...], h.astype(jnp.bfloat16),
                    preferred_element_type=jnp.float32)
        y = jax.nn.sigmoid(z + b2_ref[0, 0])                           # scalar bias from SMEM

        if ragged:
            # Tail block reads stale rows past B.  Their results never mix
            # with valid lanes (no contraction over batch); zero them so the
            # stored buffer is fully defined (Pallas also masks the OOB part
            # of the store).  Cost: a couple of vreg ops on (1, tb) only.
            lanes = lax.broadcasted_iota(jnp.int32, y.shape, dimension=1)
            valid = pl.program_id(0) * block_b + lanes < batch_size
            y = jnp.where(valid, y, 0.0)

        o_ref[...] = y.astype(o_ref.dtype)

    return kernel


def mlp_forward(x, w1, b1, w2, b2, *, block_b=None):
    """y = sigmoid(tanh(x @ w1 + b1) @ w2 + b2), matching the PyTorch module.

    x: (B, D) f32; w1: (D, H); b1: (H,); w2: (H, 1); b2: (1,)  ->  (B, 1) f32.
    """
    B, D = x.shape
    H = w1.shape[1]

    # --- generation-aware tile selection -------------------------------------
    # VMEM capacity distinguishes generations: v5e/v6e = 128 MiB, v7x = 64 MiB/TC.
    # Per-tile VMEM footprint (the f32 x tile is lane-padded 32 -> 128 lanes,
    # i.e. 4x its logical size):
    #   x f32 (tb, 32->128), double-buffered : 2 * 512 B/row = 1024 B/row
    #   x_t bf16 (32, tb)                    :                   64 B/row
    #   h f32 + bf16 (64, tb)                :            256 + 128 B/row
    #   out f32 (1->8, tb), double-buffered  :                   64 B/row
    #   => ~1.5-2 KiB/row: 16384 rows ~ 28 MiB (< 44 MiB limit, v7x)
    #                      32768 rows ~ 56 MiB (< 96 MiB limit, v5e/v6e)
    big_vmem = _tpu_vmem_capacity_bytes() >= (100 << 20)
    cap = 32768 if big_vmem else 16384
    vmem_limit = (96 << 20) if big_vmem else (44 << 20)
    if block_b is not None:
        cap = max(8, min(int(block_b), cap))
    # v7x has 2 TensorCores; the "parallel" batch axis only shards across them
    # if there are >= 2 grid steps, so split mid-size batches in two.
    if (not big_vmem) and 256 < B <= cap:
        cap = min(cap, _round_up(pl.cdiv(B, 2), 128))

    if B <= cap:
        # Single exact-shape tile: block == full dims, no padding, no masking.
        tb = B
        ragged = False
    else:
        # Multi-tile: lane-dense 128-multiple tiles, cdiv grid, masked tail.
        tb = max(128, (cap // 128) * 128)
        ragged = (B % tb) != 0
    num_blocks = pl.cdiv(B, tb)

    w1_t = jnp.transpose(w1).astype(jnp.bfloat16)        # (H, D), VMEM-resident
    b1_col = b1.reshape(H, 1).astype(jnp.float32)         # (H, 1) column bias
    w2_row = w2.reshape(1, H).astype(jnp.bfloat16)        # (H, 1) -> (1, H) row
    b2_2d = b2.reshape(1, 1).astype(jnp.float32)           # scalar -> SMEM

    out = pl.pallas_call(
        _make_kernel(B, tb, ragged),
        out_shape=jax.ShapeDtypeStruct((1, B), x.dtype),
        grid_spec=pltpu.PrefetchScalarGridSpec(
            num_scalar_prefetch=0,
            grid=(num_blocks,),
            in_specs=[
                pl.BlockSpec((tb, D), lambda i: (i, 0)),              # x (streamed)
                pl.BlockSpec((H, D), lambda i: (0, 0)),               # W1^T (resident)
                pl.BlockSpec((H, 1), lambda i: (0, 0)),               # b1 column
                pl.BlockSpec((1, H), lambda i: (0, 0)),               # w2 row
                pl.BlockSpec(memory_space=pltpu.MemorySpace.SMEM),    # b2 scalar
            ],
            out_specs=pl.BlockSpec((1, tb), lambda i: (0, i)),        # lane-dense out
        ),
        compiler_params=pltpu.CompilerParams(
            dimension_semantics=("parallel",),    # batch tiles -> both v7x TCs
            vmem_limit_bytes=vmem_limit,
        ),
    )(x, w1_t, b1_col, w2_row, b2_2d)

    # (1, B) row-major == (B, 1) row-major: this reshape is a free bitcast.
    return out.reshape(B, 1)


def init_params(key, input_size, hidden=_HIDDEN):
    """Deterministic init mimicking nn.Linear default (uniform +-1/sqrt(fan_in))."""
    k1, k2, k3, k4 = jax.random.split(key, 4)
    bound1 = 1.0 / jnp.sqrt(jnp.float32(input_size))
    bound2 = 1.0 / jnp.sqrt(jnp.float32(hidden))
    w1 = jax.random.uniform(k1, (input_size, hidden), jnp.float32, -bound1, bound1)
    b1 = jax.random.uniform(k2, (hidden,), jnp.float32, -bound1, bound1)
    w2 = jax.random.uniform(k3, (hidden, 1), jnp.float32, -bound2, bound2)
    b2 = jax.random.uniform(k4, (1,), jnp.float32, -bound2, bound2)
    return w1, b1, w2, b2


if __name__ == "__main__":
    key = jax.random.PRNGKey(0)
    kx, kp, kx2 = jax.random.split(key, 3)

    batch, input_size = 8, 32
    x = jax.random.normal(kx, (batch, input_size), jnp.float32)
    w1, b1, w2, b2 = init_params(kp, input_size)

    out = jax.block_until_ready(mlp_forward(x, w1, b1, w2, b2))
    ref = jax.nn.sigmoid(jnp.tanh(x @ w1 + b1) @ w2 + b2)
    assert out.shape == (batch, 1)
    # bf16 MXU operands with f32 accumulation -> tolerance loosened vs pure f32.
    assert jnp.allclose(out, ref, atol=5e-3, rtol=1e-3)

    # Multi-tile ragged path: cdiv grid, masked tail, no padding, no extra HBM pass.
    batch2 = 300
    x2 = jax.random.normal(kx2, (batch2, input_size), jnp.float32)
    out2 = jax.block_until_ready(mlp_forward(x2, w1, b1, w2, b2, block_b=128))
    ref2 = jax.nn.sigmoid(jnp.tanh(x2 @ w1 + b1) @ w2 + b2)
    assert out2.shape == (batch2, 1)
    assert jnp.allclose(out2, ref2, atol=5e-3, rtol=1e-3)

    print("KERNEL_OK")
</pallas_src>

<mosaic_0001>
module attributes {stable_mosaic.version = 11 : i64} {
  func.func @kernel(%arg0: i32, %arg1: memref<8x32xf32, #tpu.memory_space<vmem>>, %arg2: memref<64x32xbf16, #tpu.memory_space<vmem>>, %arg3: memref<64x1xf32, #tpu.memory_space<vmem>>, %arg4: memref<1x64xbf16, #tpu.memory_space<vmem>>, %arg5: memref<1x1xf32, #tpu.memory_space<smem>>, %arg6: memref<1x8xf32, #tpu.memory_space<vmem>>) attributes {dimension_semantics = [#tpu.dimension_semantics<parallel>], iteration_bounds = array<i64: 1>, scalar_prefetch = 0 : i64, scratch_operands = 0 : i64, tpu.core_type = #tpu.core_type<tc>, window_params = [{transform_indices = @transform_0, window_bounds = array<i64: 8, 32>}, {pipeline_mode = #tpu.pipeline_mode<synchronous>, transform_indices = @transform_1, window_bounds = array<i64: 64, 32>}, {pipeline_mode = #tpu.pipeline_mode<synchronous>, transform_indices = @transform_2, window_bounds = array<i64: 64, 1>}, {pipeline_mode = #tpu.pipeline_mode<synchronous>, transform_indices = @transform_3, window_bounds = array<i64: 1, 64>}, {transform_indices = @transform_4, window_bounds = array<i64: 1, 1>}, {transform_indices = @transform_5, window_bounds = array<i64: 1, 8>}]} {
    %c0 = arith.constant 0 : index
    %c0_0 = arith.constant 0 : index
    %0 = vector.load %arg1[%c0, %c0_0] : memref<8x32xf32, #tpu.memory_space<vmem>>, vector<8x32xf32>
    %1 = tpu.transpose %0, [1, 0] : vector<8x32xf32> -> vector<32x8xf32>
    %2 = arith.truncf %1 : vector<32x8xf32> to vector<32x8xbf16>
    %c0_1 = arith.constant 0 : index
    %c0_2 = arith.constant 0 : index
    %3 = vector.load %arg2[%c0_1, %c0_2] : memref<64x32xbf16, #tpu.memory_space<vmem>>, vector<64x32xbf16>
    %cst = arith.constant dense<0.000000e+00> : vector<64x8xf32>
    %4 = tpu.matmul %3, %2, %cst {dimension_numbers = #tpu.dot_dimension_numbers<[1], [0], [0], [1], [0, 0, 1, 1], [], []>} : vector<64x32xbf16>, vector<32x8xbf16>, vector<64x8xf32> -> vector<64x8xf32>
    %c0_3 = arith.constant 0 : index
    %c0_4 = arith.constant 0 : index
    %5 = vector.load %arg3[%c0_3, %c0_4] : memref<64x1xf32, #tpu.memory_space<vmem>>, vector<64x1xf32>
    %6 = vector.broadcast %5 : vector<64x1xf32> to vector<64x8xf32>
    %7 = arith.addf %4, %6 : vector<64x8xf32>
    %8 = math.tanh %7 : vector<64x8xf32>
    %c0_5 = arith.constant 0 : index
    %c0_6 = arith.constant 0 : index
    %9 = vector.load %arg4[%c0_5, %c0_6] : memref<1x64xbf16, #tpu.memory_space<vmem>>, vector<1x64xbf16>
    %10 = arith.truncf %8 : vector<64x8xf32> to vector<64x8xbf16>
    %cst_7 = arith.constant dense<0.000000e+00> : vector<1x8xf32>
    %11 = tpu.matmul %9, %10, %cst_7 {dimension_numbers = #tpu.dot_dimension_numbers<[1], [0], [0], [1], [0, 0, 1, 1], [], []>} : vector<1x64xbf16>, vector<64x8xbf16>, vector<1x8xf32> -> vector<1x8xf32>
    %c0_8 = arith.constant 0 : index
    %c0_9 = arith.constant 0 : index
    %12 = memref.load %arg5[%c0_8, %c0_9] : memref<1x1xf32, #tpu.memory_space<smem>>
    %13 = vector.broadcast %12 : f32 to vector<1x8xf32>
    %14 = arith.addf %11, %13 : vector<1x8xf32>
    %15 = arith.negf %14 : vector<1x8xf32>
    %16 = math.exp %15 : vector<1x8xf32>
    %cst_10 = arith.constant 1.000000e+00 : f32
    %17 = vector.broadcast %cst_10 : f32 to vector<1x8xf32>
    %18 = arith.addf %17, %16 : vector<1x8xf32>
    %19 = arith.divf %17, %18 : vector<1x8xf32>
    %c0_11 = arith.constant 0 : index
    %c0_12 = arith.constant 0 : index
    %20 = vector.load %arg6[%c0_11, %c0_12] : memref<1x8xf32, #tpu.memory_space<vmem>>, vector<1x8xf32>
    tpu.vector_store %arg6[%c0_11, %c0_12], %19 {strides = array<i32>} : memref<1x8xf32, #tpu.memory_space<vmem>>, vector<1x8xf32>,
    return
  }
  func.func @transform_0(%arg0: i32) -> (i32, i32) {
    %c0_i32 = arith.constant 0 : i32
    %c0_i32_0 = arith.constant 0 : i32
    return %arg0, %c0_i32 : i32, i32
  }
  func.func @transform_1(%arg0: i32) -> (i32, i32) {
    %c0_i32 = arith.constant 0 : i32
    %c0_i32_0 = arith.constant 0 : i32
    %c0_i32_1 = arith.constant 0 : i32
    return %c0_i32, %c0_i32_0 : i32, i32
  }
  func.func @transform_2(%arg0: i32) -> (i32, i32) {
    %c0_i32 = arith.constant 0 : i32
    %c0_i32_0 = arith.constant 0 : i32
    %c0_i32_1 = arith.constant 0 : i32
    return %c0_i32, %c0_i32_0 : i32, i32
  }
  func.func @transform_3(%arg0: i32) -> (i32, i32) {
    %c0_i32 = arith.constant 0 : i32
    %c0_i32_0 = arith.constant 0 : i32
    %c0_i32_1 = arith.constant 0 : i32
    return %c0_i32, %c0_i32_0 : i32, i32
  }
  func.func @transform_4(%arg0: i32) -> (i32, i32) {
    %c0_i32 = arith.constant 0 : i32
    %c0_i32_0 = arith.constant 0 : i32
    %c0_i32_1 = arith.constant 0 : i32
    return %c0_i32, %c0_i32_0 : i32, i32
  }
  func.func @transform_5(%arg0: i32) -> (i32, i32) {
    %c0_i32 = arith.constant 0 : i32
    %c0_i32_0 = arith.constant 0 : i32
    return %c0_i32, %arg0 : i32, i32
  }
}

</mosaic_0001>

<bundles_post_ra>
// kernel: tpu_custom_call.1
= control target key start
LH: loop header
LB: loop body
LE: loop exit
PB: predicated region body
PF: predicated region fallthrough
CT: control target
= control target key end

     0   :  { %s407_s0 = inlined_call_operand.vmem [shape: f32[8,32], index: 0, kind: input, shape index: {}]   ;;  %s408_s1 = inlined_call_operand.vmem [shape: bf16[64,32], index: 1, kind: input, shape index: {}]   ;;  %s409_s2 = inlined_call_operand.vmem [shape: f32[64,1], index: 2, kind: input, shape index: {}]   ;;  %s410_s3 = inlined_call_operand.vmem [shape: bf16[1,64], index: 3, kind: input, shape index: {}]   ;;  %s411_s4 = inlined_call_operand.<no memory space> [shape: f32[1,1], index: 4, kind: input, shape index: {}]   ;;  %s412_s5 = inlined_call_operand.hbm [shape: f32[1,8], index: 5, kind: output, shape index: {}]  }
   0x1   :  { %v23_v0 = vld [vmem:[%s407_s0] sm:$0xff] }
   0x2   :  { %11 = vsyncpa [#allocation4], 0  ;;  %24 = vxpose.xlu0.b32.start.end [1/1] (short) (narrow) %v23_v0, 32  ;;  %v327_v2 = vmov 0   ;;  %v73_v3 = vld [vmem:[%s409_s2 + $0x38] sm:$0xff]  ;;  %v70_v5 = vld [vmem:[%s409_s2 + $0x20] sm:$0xff]  ;;  %v190_v57 = vstv %s411_s4 }
   0x3   :  { %279 = vset.pattern.permute.xlu1 %v327_v2  ;;  %280 = vset.pattern.permute.xlu2 %v327_v2  ;;  %v69_v7 = vld [vmem:[%s409_s2 + $0x18] sm:$0xff]  ;;  %v72_v8 = vld [vmem:[%s409_s2 + $0x30] sm:$0xff]  ;;  %v71_v9 = vld [vmem:[%s409_s2 + $0x28] sm:$0xff]  ;;  %vm134_vm0 = vcmask 261120   ;;  %vm191_vm1 = vcmask 523264   ;;  %s236_s4 = sshll.u32 %s412_s5, 4  ;;  %s237_s4 = int_to_ptr.hbm [resolvable:$true] %s236_s4 }
   0x4   :  { %111 = vperm.xlu1 %279, %v73_v3   ;;  %101 = vperm.xlu2 %280, %v71_v9   ;;  %v67_v12 = vld [vmem:[%s409_s2 + $0x8] sm:$0xff]  ;;  %v68_v13 = vld [vmem:[%s409_s2 + $0x10] sm:$0xff]  ;;  %v267_v16 = vld [vmem:[%s408_s1] sm:$0xff]  ;;  %vm227_vm5 = vcmask 57344  }
   0x5   :  { %v268_v15 = vld [vmem:[%s408_s1 + $0x8] sm:$0xff]  ;;  %v270_v17 = vld [vmem:[%s408_s1 + $0x18] sm:$0xff]  ;;  %v66_v18 = vld [vmem:[%s409_s2] sm:$0xff] }
   0x6   :  { %v269_v19 = vld [vmem:[%s408_s1 + $0x10] sm:$0xff]  ;;  %v184_v56 = vld [vmem:[%s410_s3] sm:$0x1]  ;;  %s328_s3 = smov [#allocation3]  }
   0x7   :  { %s234_s20 = sshll.u32 %s328_s3, 4  ;;  %s235_s20 = int_to_ptr.vmem [resolvable:$true] %s234_s20 }
   0xc   :  { %96 = vperm.xlu1 %279, %v70_v5   ;;  %86 = vperm.xlu2 %280, %v68_v13  }
  0x14   :  { %91 = vperm.xlu1 %279, %v69_v7   ;;  %76 = vperm.xlu2 %280, %v66_v18  }
  0x1c   :  { %81 = vperm.xlu1 %279, %v67_v12  }
  0x5e   :  { %v102_v24 = vpop.permute.xlu2 %101 }
  0x66   :  { %v87_v31 = vpop.permute.xlu2 %86 }
  0x69   :  { %278 = vset.pattern.permute.xlu0 %v327_v2 }
  0x6e   :  { %v77_v39 = vpop.permute.xlu2 %76 }
  0x76   :  { %v112_v20 = vpop.permute.xlu1 %111 }
  0x7e   :  { %v97_v25 = vpop.permute.xlu1 %96 }
  0x86   :  { %v92_v30 = vpop.permute.xlu1 %91 }
  0x88   :  { %106 = vperm.xlu0 %278, %v72_v8  }
  0x8e   :  { %v82_v42 = vpop.permute.xlu1 %81 }
  0xa6   :  { %v40_v1 = vpop.trf.xlu0 }
  0xae   :  { %v41_v4 = vpop.trf.xlu0 }
  0xaf   :  { %v56_v14 = vpack.c.bf16 %v41_v4, %v40_v1 }
  0xb6   :  { %v42_v6 = vpop.trf.xlu0 }
  0xbe   :  { %v43_v10 = vpop.trf.xlu0 }
  0xbf   :  { %v57_v11 = vpack.c.bf16 %v43_v10, %v42_v6 }
  0xc1   :  { %153 = vmatpush.bf16.msra.mxu0 %v57_v11  ;;  %271 = vmatpush.bf16.msra.mxu2 %v57_v11 }
  0xc2   :  { %272 = vmatpush.bf16.msra.mxu3 %v57_v11 }
  0xc5   :  { %154 = vmatpush.bf16.msra.mxu0 %v56_v14  ;;  %273 = vmatpush.bf16.msra.mxu2 %v56_v14 }
  0xc6   :  { %274 = vmatpush.bf16.msra.mxu3 %v56_v14 }
  0xc8   :  { %262 = vmatmul.msk.bf16.vlgmr.msra.gmra.mxu2 %vm134_vm0, %v268_v15  ;;  %261 = vmatmul.msk.bf16.vlgmr.msra.gmra.mxu0 %vm134_vm0, %v267_v16 }
  0xc9   :  { %264 = vmatmul.msk.bf16.vlgmr.msra.gmra.mxu3 %vm134_vm0, %v270_v17 }
  0xd8   :  { %263 = vmatmul.msk.bf16.gmra.mxu2 %vm134_vm0, %v269_v19 }
  0xfa   :  { %v107_v23 = vpop.permute.xlu0 %106 }
 0x145   :  { %v156_v33 = vpop.f32.mrf.mxu0 }
 0x146   :  { %v157_v45 = vadd.f32 %v156_v33, %v77_v39 }
 0x14b   :  { %v161_v21 = vpop.f32.mrf.mxu2 }
 0x14c   :  { %v171_v22 = vpop.f32.mrf.mxu3  ;;  %v162_v44 = vadd.f32 %v161_v21, %v87_v31 }
 0x14d   :  { %v172_v26 = vadd.f32 %v171_v22, %v107_v23  ;;  %v158_v43 = vpop.f32.mrf.mxu0 }
 0x14e   :  { %v159_v46 = vadd.f32 %v158_v43, %v82_v42 }
 0x14f   :  { %281 = vtanh.f32 %v172_v26 }
 0x153   :  { %v163_v27 = vpop.f32.mrf.mxu2 }
 0x154   :  { %v173_v28 = vpop.f32.mrf.mxu3  ;;  %v164_v40 = vadd.f32 %v163_v27, %v92_v30 }
 0x155   :  { %v174_v29 = vadd.f32 %v173_v28, %v112_v20  ;;  %v282_v32 = vpop.eup %281 }
 0x157   :  { %283 = vtanh.f32 %v174_v29 }
 0x15b   :  { %v166_v34 = vpop.f32.mrf.mxu2 }
 0x15c   :  { %v167_v37 = vadd.f32 %v166_v34, %v97_v25 }
 0x15d   :  { %v284_v35 = vpop.eup %283 }
 0x15e   :  { %v188_v36 = vpack.c.bf16 %v284_v35, %v282_v32  ;;  %285 = vtanh.f32 %v167_v37 }
 0x160   :  { %199 = vmatpush.bf16.msra.mxu1 %v188_v36 }
 0x163   :  { %v168_v38 = vpop.f32.mrf.mxu2 }
 0x164   :  { %v169_v41 = vadd.f32 %v168_v38, %v102_v24  ;;  %v286_v47 = vpop.eup %285 }
 0x166   :  { %287 = vtanh.f32 %v169_v41 }
 0x167   :  { %289 = vtanh.f32 %v164_v40 }
 0x168   :  { %291 = vtanh.f32 %v162_v44 }
 0x169   :  { %293 = vtanh.f32 %v157_v45 }
 0x16a   :  { %295 = vtanh.f32 %v159_v46 }
 0x16c   :  { %v288_v48 = vpop.eup %287 }
 0x16d   :  { %v187_v49 = vpack.c.bf16 %v288_v48, %v286_v47  ;;  %v290_v50 = vpop.eup %289 }
 0x16e   :  { %v292_v51 = vpop.eup %291 }
 0x16f   :  { %200 = vmatpush.bf16.msra.mxu1 %v187_v49  ;;  %v294_v52 = vpop.eup %293  ;;  %v186_v53 = vpack.c.bf16 %v290_v50, %v292_v51 }
 0x170   :  { %v296_v54 = vpop.eup %295 }
 0x171   :  { %v185_v55 = vpack.c.bf16 %v296_v54, %v294_v52 }
 0x173   :  { %201 = vmatpush.bf16.msra.mxu1 %v186_v53 }
 0x177   :  { %202 = vmatpush.bf16.msra.mxu1 %v185_v55 }
 0x17a   :  { %265 = vmatmul.msk.bf16.vlgmr.msra.gmra.mxu1 %vm191_vm1, %v184_v56 }
 0x1f7   :  { %v204_v58 = vpop.f32.mrf.mxu1 }
 0x1f8   :  { %v205_v59 = vadd.f32 %v204_v58, %v190_v57 }
 0x1fa   :  { %v266_v60 = vmul.f32 -1.442695, %v205_v59 }
 0x1fc   :  { %297 = vpow2.f32 %v266_v60 }
 0x1ff   :  { %v206_v61 = vpop.f32.mrf.mxu1 }
 0x202   :  { %v298_v62 = vpop.eup %297 }
 0x203   :  { %v211_v63 = vadd.f32 1.0, %v298_v62 }
 0x205   :  { %299 = vrcp.f32 %v211_v63  ;;  %v223_v3 = vand.u32 2147483648, %v211_v63  ;;  %v221_v5 = vand.u32 2147483647, %v211_v63  ;;  %vm217_vm3 = vweird.f32 %v211_v63 }
 0x207   :  { %v224_v7 = vor.u32 1.1754944e-38, %v223_v3  ;;  %vm222_vm6 = vcmp.eq.f32.partialorder %v221_v5, 8.507059e+37 }
 0x20b   :  { %v300_v0 = vpop.eup %299 }
 0x20c   :  { %v213_v1 = vmul.f32 %v300_v0, %v211_v63  ;;  %vm218_vm2 = vweird.f32 %v300_v0 }
 0x20d   :  { %vm219_vm4 = vmor %vm217_vm3, %vm218_vm2 }
 0x20e   :  { %v214_v2 = vsub.f32 1.0, %v213_v1 }
 0x210   :  { %v215_v4 = vmul.f32 %v300_v0, %v214_v2 }
 0x212   :  { %v216_v6 = vadd.f32 %v300_v0, %v215_v4 }
 0x214   :  { %v220_v8 = vsel %vm219_vm4, %v300_v0, %v216_v6 }
 0x215   :  { %v225_v9 = vsel %vm222_vm6, %v224_v7, %v220_v8 }
 0x216   :  { %228 = vst.msk [vmem:[#allocation3] sm:$0x1] %vm227_vm5, %v225_v9 }
 0x217   :  { %239 = dma.vmem_to_hbm [thread:$0]  %s235_s20, 16, %s237_s4, [#allocation4]  }
 0x218   :  { %325 = dma.done.wait [#allocation4], 16  }
 0x219   :  { %326 = vsyncadd [#allocation4], 4294967280 }
 0x21a   :  { %244 = vsyncpa [#allocation4], 1 }

</bundles_post_ra>
